<compile_context>
chip_gen: v7x
topology: tpu7x:2x2x1
jax: 0.10.0
libtpu: 0.0.40
codegen_flags: <defaults>
</compile_context>

<pallas_src>
import functools

import jax
import jax.numpy as jnp
from jax.experimental import pallas as pl
from jax.experimental.pallas import tpu as pltpu

_LANE = 128            # vreg lane width (last dim)
_SUBLANE = 8           # f32 sublane width (second-to-last dim)
_SINGLE_BLOCK_ROWS = 1024   # below this, grid/pipeline machinery buys nothing


def _round_up(n, m):
    return (n + m - 1) // m * m


@functools.lru_cache(maxsize=None)
def _vmem_limit_bytes():
    """Generation-keyed scoped-VMEM budget."""
    try:
        cap = int(pltpu.get_tpu_info().vmem_capacity_bytes)
    except Exception:
        cap = 0
    if cap >= 128 * 1024 * 1024:      # v5e / v6e: 128 MiB physical
        return 96 * 1024 * 1024
    return 32 * 1024 * 1024           # v7x (64 MiB physical) / unknown: stay safe


def _mlp_kernel(*refs, n_hlayer, feature_in):
    """One batch tile of the MLP; activations live in vregs/VMEM throughout."""
    if n_hlayer > 0:
        (x_ref, w_in_ref, b_in_ref, w_h_ref, b_h_ref,
         w_out_ref, b_out_ref, o_ref, xpad_ref) = refs
    else:
        (x_ref, w_in_ref, b_in_ref, w_out_ref, b_out_ref,
         o_ref, xpad_ref) = refs

    # Zero-extend x to the 128-lane padded contraction width *in VMEM*
    # (no HBM lane padding; only the real feature_in columns stream from HBM).
    xpad_ref[...] = jnp.zeros_like(xpad_ref)
    xpad_ref[:, 0:feature_in] = x_ref[...]

    # input layer (no activation, matching the PyTorch forward)
    h = jnp.dot(xpad_ref[...], w_in_ref[...],
                preferred_element_type=jnp.float32) + b_in_ref[...]

    # hidden layers: relu(Linear(h)) — n_hlayer is tiny, static unroll is fine
    for i in range(n_hlayer):
        h = jnp.dot(h, w_h_ref[i],
                    preferred_element_type=jnp.float32) + b_h_ref[i]
        h = jnp.maximum(h, 0.0)

    # output layer (raw logits); slice off the padded lanes before the store
    out = jnp.dot(h, w_out_ref[...],
                  preferred_element_type=jnp.float32) + b_out_ref[...]
    o_ref[...] = out[:, :o_ref.shape[-1]].astype(o_ref.dtype)


@functools.partial(jax.jit,
                   static_argnames=("n_hlayer", "feature_out", "batch_tile"))
def ann_forward(x, prepared, *, n_hlayer, feature_out, batch_tile=2048):
    """ANN_Class.forward on TPU. `prepared` comes from prepare_params()."""
    w_in, b_in, w_h, b_h, w_out, b_out = prepared
    batch, feature_in = x.shape
    fi_p, h_p = w_in.shape

    kernel = functools.partial(_mlp_kernel, n_hlayer=n_hlayer,
                               feature_in=feature_in)

    w_args = [w_in, b_in]
    if n_hlayer > 0:                     # skip DMAing the hidden stack if unused
        w_args += [w_h, b_h]
    w_args += [w_out, b_out]

    tb_cap = _round_up(batch_tile, _SUBLANE)

    # ---- tiny batch: single block, no grid / pipeline machinery ------------
    if batch <= min(tb_cap, _SINGLE_BLOCK_ROWS):
        return pl.pallas_call(
            kernel,
            out_shape=jax.ShapeDtypeStruct((batch, feature_out), jnp.float32),
            scratch_shapes=[pltpu.VMEM((batch, fi_p), jnp.float32)],
            compiler_params=pltpu.CompilerParams(
                vmem_limit_bytes=_vmem_limit_bytes()),
        )(x, *w_args)

    # ---- larger batch: 1-D batch grid, double-buffered x / out tiles -------
    # Pick tb so the grid has >= 2 steps (v7x: both TensorCores get work).
    tb = min(tb_cap, _round_up(pl.cdiv(batch, 2), _SUBLANE))
    b_pad = _round_up(batch, tb)
    grid = (b_pad // tb,)
    x_p = jnp.pad(x, ((0, b_pad - batch), (0, 0)))   # row pad only, no lane pad

    x_spec = pl.BlockSpec((tb, feature_in), lambda i: (i, 0))
    o_spec = pl.BlockSpec((tb, feature_out), lambda i: (i, 0))
    const2 = lambda i: (0, 0)
    const3 = lambda i: (0, 0, 0)

    in_specs = [x_spec,
                pl.BlockSpec((fi_p, h_p), const2),
                pl.BlockSpec((1, h_p), const2)]
    if n_hlayer > 0:
        in_specs += [pl.BlockSpec((n_hlayer, h_p, h_p), const3),
                     pl.BlockSpec((n_hlayer, 1, h_p), const3)]
    in_specs += [pl.BlockSpec((h_p, w_out.shape[1]), const2),
                 pl.BlockSpec((1, b_out.shape[1]), const2)]

    out_padded = pl.pallas_call(
        kernel,
        out_shape=jax.ShapeDtypeStruct((b_pad, feature_out), jnp.float32),
        grid=grid,
        in_specs=in_specs,
        out_specs=o_spec,
        scratch_shapes=[pltpu.VMEM((tb, fi_p), jnp.float32)],
        compiler_params=pltpu.CompilerParams(
            dimension_semantics=("parallel",),       # v7x: shard batch over 2 TCs
            vmem_limit_bytes=_vmem_limit_bytes(),
        ),
    )(x_p, *w_args)
    return out_padded[:batch]


def prepare_params(params, *, n_hlayer):
    """Pad weights ONCE (hidden/contraction dims -> 128 lanes), keep f32."""
    w_in, b_in, w_h, b_h, w_out, b_out = params
    feature_in, n_hunit = w_in.shape
    feature_out = w_out.shape[1]
    fi_p = _round_up(feature_in, _LANE)
    h_p = _round_up(n_hunit, _LANE)
    fo_p = _round_up(feature_out, _LANE)

    def pad2(a, rows, cols):
        return jnp.pad(a, ((0, rows - a.shape[0]),
                           (0, cols - a.shape[1]))).astype(jnp.float32)

    w_in_p = pad2(w_in, fi_p, h_p)
    b_in_p = pad2(b_in, 1, h_p)
    if n_hlayer > 0:
        w_h_p = jnp.pad(w_h[:n_hlayer],
                        ((0, 0), (0, h_p - w_h.shape[1]),
                         (0, h_p - w_h.shape[2]))).astype(jnp.float32)
        b_h_p = jnp.pad(b_h[:n_hlayer],
                        ((0, 0), (0, 0),
                         (0, h_p - b_h.shape[2]))).astype(jnp.float32)
    else:
        w_h_p = jnp.zeros((0, h_p, h_p), jnp.float32)
        b_h_p = jnp.zeros((0, 1, h_p), jnp.float32)
    w_out_p = pad2(w_out, h_p, fo_p)
    b_out_p = pad2(b_out, 1, fo_p)
    return (w_in_p, b_in_p, w_h_p, b_h_p, w_out_p, b_out_p)


def init_params(key, feature_in, feature_out, n_hunit, n_hlayer):
    """PyTorch-style U(-1/sqrt(fan_in), 1/sqrt(fan_in)) init, weights as (in, out)."""
    keys = jax.random.split(key, 6)

    def lin(kw, kb, fan_in, fan_out):
        bound = 1.0 / jnp.sqrt(jnp.float32(fan_in))
        w = jax.random.uniform(kw, (fan_in, fan_out), jnp.float32, -bound, bound)
        b = jax.random.uniform(kb, (1, fan_out), jnp.float32, -bound, bound)
        return w, b

    w_in, b_in = lin(keys[0], keys[1], feature_in, n_hunit)
    bound_h = 1.0 / jnp.sqrt(jnp.float32(n_hunit))
    w_h = jax.random.uniform(keys[2], (n_hlayer, n_hunit, n_hunit),
                             jnp.float32, -bound_h, bound_h)
    b_h = jax.random.uniform(keys[3], (n_hlayer, 1, n_hunit),
                             jnp.float32, -bound_h, bound_h)
    w_out, b_out = lin(keys[4], keys[5], n_hunit, feature_out)
    return w_in, b_in, w_h, b_h, w_out, b_out


def ann_forward_ref(x, params, *, n_hlayer):
    """Pure-JAX f32 reference (PyTorch-equivalent math)."""
    w_in, b_in, w_h, b_h, w_out, b_out = params
    hp = jax.lax.Precision.HIGHEST
    h = jnp.dot(x, w_in, precision=hp) + b_in
    for i in range(n_hlayer):
        h = jnp.maximum(jnp.dot(h, w_h[i], precision=hp) + b_h[i], 0.0)
    return jnp.dot(h, w_out, precision=hp) + b_out


if __name__ == "__main__":
    # iris-like problem: 4 input features, 3 classes; small hidden size.
    feature_in, feature_out = 4, 3
    n_hunit, n_hlayer = 32, 2

    key = jax.random.PRNGKey(0)
    k_x1, k_x2, k_p = jax.random.split(key, 3)
    params = init_params(k_p, feature_in, feature_out, n_hunit, n_hlayer)
    prepared = prepare_params(params, n_hlayer=n_hlayer)   # padded once, reused

    # (1) tiny iris batch (batch_size=12 in the reference script): single-block path
    x_small = jax.random.normal(k_x1, (12, feature_in), jnp.float32)
    out_small = jax.block_until_ready(
        ann_forward(x_small, prepared, n_hlayer=n_hlayer, feature_out=feature_out))
    ref_small = ann_forward_ref(x_small, params, n_hlayer=n_hlayer)
    assert out_small.shape == (12, feature_out)
    assert jnp.allclose(out_small, ref_small, atol=1e-2, rtol=1e-2), "small-batch mismatch"

    # (2) larger batch: tiled grid path (>=2 steps, double-buffered x/out tiles)
    x_large = jax.random.normal(k_x2, (5000, feature_in), jnp.float32)
    out_large = jax.block_until_ready(
        ann_forward(x_large, prepared, n_hlayer=n_hlayer, feature_out=feature_out))
    ref_large = ann_forward_ref(x_large, params, n_hlayer=n_hlayer)
    assert out_large.shape == (5000, feature_out)
    assert jnp.allclose(out_large, ref_large, atol=1e-2, rtol=1e-2), "large-batch mismatch"

    # TODO(synk): training loop (CrossEntropyLoss + SGD) and predict() accuracy
    # bookkeeping are host-side PyTorch code, not part of the module's forward
    # pass, and are not translated.
    print("KERNEL_OK")
</pallas_src>

<mosaic_0001>
module attributes {stable_mosaic.version = 11 : i64} {
  func.func @_mlp_kernel(%arg0: memref<12x4xf32, #tpu.memory_space<vmem>>, %arg1: memref<128x128xf32, #tpu.memory_space<vmem>>, %arg2: memref<1x128xf32, #tpu.memory_space<vmem>>, %arg3: memref<2x128x128xf32, #tpu.memory_space<vmem>>, %arg4: memref<2x1x128xf32, #tpu.memory_space<vmem>>, %arg5: memref<128x128xf32, #tpu.memory_space<vmem>>, %arg6: memref<1x128xf32, #tpu.memory_space<vmem>>, %arg7: memref<12x3xf32, #tpu.memory_space<vmem>>, %arg8: memref<12x128xf32, #tpu.memory_space<vmem>>) attributes {dimension_semantics = [], scalar_prefetch = 0 : i64, scratch_operands = 1 : i64, tpu.core_type = #tpu.core_type<tc>} {
    %cst = arith.constant 0.000000e+00 : f32
    %0 = vector.broadcast %cst : f32 to vector<12x128xf32>
    %c0 = arith.constant 0 : index
    %c0_0 = arith.constant 0 : index
    %1 = vector.load %arg8[%c0, %c0_0] : memref<12x128xf32, #tpu.memory_space<vmem>>, vector<12x128xf32>
    tpu.vector_store %arg8[%c0, %c0_0], %0 {strides = array<i32>} : memref<12x128xf32, #tpu.memory_space<vmem>>, vector<12x128xf32>,
    %c0_1 = arith.constant 0 : index
    %c0_2 = arith.constant 0 : index
    %2 = vector.load %arg0[%c0_1, %c0_2] : memref<12x4xf32, #tpu.memory_space<vmem>>, vector<12x4xf32>
    %c0_3 = arith.constant 0 : index
    %c0_4 = arith.constant 0 : index
    %3 = vector.load %arg8[%c0_3, %c0_4] : memref<12x128xf32, #tpu.memory_space<vmem>>, vector<12x4xf32>
    tpu.vector_store %arg8[%c0_3, %c0_4], %2 {strides = array<i32>} : memref<12x128xf32, #tpu.memory_space<vmem>>, vector<12x4xf32>,
    %c0_5 = arith.constant 0 : index
    %c0_6 = arith.constant 0 : index
    %4 = vector.load %arg8[%c0_5, %c0_6] : memref<12x128xf32, #tpu.memory_space<vmem>>, vector<12x128xf32>
    %c0_7 = arith.constant 0 : index
    %c0_8 = arith.constant 0 : index
    %5 = vector.load %arg1[%c0_7, %c0_8] : memref<128x128xf32, #tpu.memory_space<vmem>>, vector<128x128xf32>
    %cst_9 = arith.constant dense<0.000000e+00> : vector<12x128xf32>
    %6 = tpu.matmul %4, %5, %cst_9 {dimension_numbers = #tpu.dot_dimension_numbers<[1], [0], [0], [1], [0, 0, 1, 1], [], []>} : vector<12x128xf32>, vector<128x128xf32>, vector<12x128xf32> -> vector<12x128xf32>
    %c0_10 = arith.constant 0 : index
    %c0_11 = arith.constant 0 : index
    %7 = vector.load %arg2[%c0_10, %c0_11] : memref<1x128xf32, #tpu.memory_space<vmem>>, vector<1x128xf32>
    %8 = vector.broadcast %7 : vector<1x128xf32> to vector<12x128xf32>
    %9 = arith.addf %6, %8 : vector<12x128xf32>
    %c0_12 = arith.constant 0 : index
    %c0_13 = arith.constant 0 : index
    %c0_14 = arith.constant 0 : index
    %10 = vector.load %arg3[%c0_12, %c0_13, %c0_14] : memref<2x128x128xf32, #tpu.memory_space<vmem>>, vector<1x128x128xf32>
    %11 = vector.shape_cast %10 : vector<1x128x128xf32> to vector<128x128xf32>
    %cst_15 = arith.constant dense<0.000000e+00> : vector<12x128xf32>
    %12 = tpu.matmul %9, %11, %cst_15 {dimension_numbers = #tpu.dot_dimension_numbers<[1], [0], [0], [1], [0, 0, 1, 1], [], []>} : vector<12x128xf32>, vector<128x128xf32>, vector<12x128xf32> -> vector<12x128xf32>
    %c0_16 = arith.constant 0 : index
    %c0_17 = arith.constant 0 : index
    %c0_18 = arith.constant 0 : index
    %13 = vector.load %arg4[%c0_16, %c0_17, %c0_18] : memref<2x1x128xf32, #tpu.memory_space<vmem>>, vector<1x1x128xf32>
    %14 = vector.shape_cast %13 : vector<1x1x128xf32> to vector<1x128xf32>
    %15 = vector.broadcast %14 : vector<1x128xf32> to vector<12x128xf32>
    %16 = arith.addf %12, %15 : vector<12x128xf32>
    %cst_19 = arith.constant 0.000000e+00 : f32
    %17 = vector.broadcast %cst_19 : f32 to vector<12x128xf32>
    %18 = arith.maximumf %16, %17 : vector<12x128xf32>
    %c1 = arith.constant 1 : index
    %c0_20 = arith.constant 0 : index
    %c0_21 = arith.constant 0 : index
    %19 = vector.load %arg3[%c1, %c0_20, %c0_21] : memref<2x128x128xf32, #tpu.memory_space<vmem>>, vector<1x128x128xf32>
    %20 = vector.shape_cast %19 : vector<1x128x128xf32> to vector<128x128xf32>
    %cst_22 = arith.constant dense<0.000000e+00> : vector<12x128xf32>
    %21 = tpu.matmul %18, %20, %cst_22 {dimension_numbers = #tpu.dot_dimension_numbers<[1], [0], [0], [1], [0, 0, 1, 1], [], []>} : vector<12x128xf32>, vector<128x128xf32>, vector<12x128xf32> -> vector<12x128xf32>
    %c1_23 = arith.constant 1 : index
    %c0_24 = arith.constant 0 : index
    %c0_25 = arith.constant 0 : index
    %22 = vector.load %arg4[%c1_23, %c0_24, %c0_25] : memref<2x1x128xf32, #tpu.memory_space<vmem>>, vector<1x1x128xf32>
    %23 = vector.shape_cast %22 : vector<1x1x128xf32> to vector<1x128xf32>
    %24 = vector.broadcast %23 : vector<1x128xf32> to vector<12x128xf32>
    %25 = arith.addf %21, %24 : vector<12x128xf32>
    %cst_26 = arith.constant 0.000000e+00 : f32
    %26 = vector.broadcast %cst_26 : f32 to vector<12x128xf32>
    %27 = arith.maximumf %25, %26 : vector<12x128xf32>
    %c0_27 = arith.constant 0 : index
    %c0_28 = arith.constant 0 : index
    %28 = vector.load %arg5[%c0_27, %c0_28] : memref<128x128xf32, #tpu.memory_space<vmem>>, vector<128x128xf32>
    %cst_29 = arith.constant dense<0.000000e+00> : vector<12x128xf32>
    %29 = tpu.matmul %27, %28, %cst_29 {dimension_numbers = #tpu.dot_dimension_numbers<[1], [0], [0], [1], [0, 0, 1, 1], [], []>} : vector<12x128xf32>, vector<128x128xf32>, vector<12x128xf32> -> vector<12x128xf32>
    %c0_30 = arith.constant 0 : index
    %c0_31 = arith.constant 0 : index
    %30 = vector.load %arg6[%c0_30, %c0_31] : memref<1x128xf32, #tpu.memory_space<vmem>>, vector<1x128xf32>
    %31 = vector.broadcast %30 : vector<1x128xf32> to vector<12x128xf32>
    %32 = arith.addf %29, %31 : vector<12x128xf32>
    %33 = vector.extract_strided_slice %32 {offsets = [0, 0], sizes = [12, 3], strides = [1, 1]} : vector<12x128xf32> to vector<12x3xf32>
    %c0_32 = arith.constant 0 : index
    %c0_33 = arith.constant 0 : index
    %34 = vector.load %arg7[%c0_32, %c0_33] : memref<12x3xf32, #tpu.memory_space<vmem>>, vector<12x3xf32>
    tpu.vector_store %arg7[%c0_32, %c0_33], %33 {strides = array<i32>} : memref<12x3xf32, #tpu.memory_space<vmem>>, vector<12x3xf32>,
    return
  }
}

</mosaic_0001>

<bundles_post_ra>
// kernel: ann_forward.1
= control target key start
LH: loop header
LB: loop body
LE: loop exit
PB: predicated region body
PF: predicated region fallthrough
CT: control target
= control target key end

     0   :  { %12 = vsyncpa [#allocation4], 0  ;;  %s1028_s0 = inlined_call_operand.vmem [shape: f32[12,4], index: 0, kind: input, shape index: {}]   ;;  %s1029_s1 = inlined_call_operand.hbm [shape: f32[128,128], index: 1, kind: input, shape index: {}]   ;;  %s1030_s2 = inlined_call_operand.vmem [shape: f32[1,128], index: 2, kind: input, shape index: {}]   ;;  %s1031_s3 = inlined_call_operand.hbm [shape: f32[2,128,128], index: 3, kind: input, shape index: {}]   ;;  %s1032_s4 = inlined_call_operand.vmem [shape: f32[2,1,128], index: 4, kind: input, shape index: {}]   ;;  %s1033_s5 = inlined_call_operand.hbm [shape: f32[128,128], index: 5, kind: input, shape index: {}]   ;;  %s1034_s6 = inlined_call_operand.vmem [shape: f32[1,128], index: 6, kind: input, shape index: {}]   ;;  %s1035_s7 = inlined_call_operand.vmem [shape: f32[12,3], index: 7, kind: output, shape index: {}]  }
   0x1   :  { %13 = vsyncpa [#allocation6], 0  ;;  %s906_s24 = smov [#allocation5]   ;;  %s907_s26 = smov [#allocation3]  }
   0x2   :  { %s35_s25 = sshll.u32 %s906_s24, 4  ;;  %s21_s27 = sshll.u32 %s907_s26, 4  ;;  %s36_s25 = int_to_ptr.vmem [resolvable:$true] %s35_s25  ;;  %s952_s27 = int_to_ptr.vmem [resolvable:$true] %s21_s27 }
   0x3   :  { %s836_s30 = scalar_lea.hbm %s1031_s3, 4096 }
   0x4   :  { %p837_p0 = scmp.ne.s32.totalorder %s1031_s3, %s836_s30  ;;  %p840_p1 = scmp.lt.u32.totalorder %s836_s30, %s1031_s3 }
   0x6   :  { %p842_p2 = pnand %p840_p1, %p837_p0 }
   0x8   :  { %845 = shalt.err (!%p842_p2)
}
   0x9   :  { %s846_s12 = scalar_lea.vmem %s36_s25, 4096  ;;  %p851_p4 = scmp.lt.s32.totalorder %s36_s25, %s36_s25 }
   0xa   :  { %p847_p3 = scmp.ne.s32.totalorder %s36_s25, %s846_s12  ;;  %p852_p5 = scmp.lt.s32.totalorder %s846_s12, %s846_s12 }
   0xc   :  { %p853_p6 = por %p852_p5, %p851_p4 }
   0xe   :  { %p854_p7 = pnand %p853_p6, %p847_p3 }
  0x10   :  { %857 = shalt.err (!%p854_p7)
}
  0x11   :  { %s908_s13 = smov 128   ;;  %s909_s14 = smov 8  }
  0x12   :  { %41 = dma.hbm_to_vmem [thread:$0]  %s1031_s3, 4096, %s36_s25, [#allocation6], %s908_s13, %s908_s13, %s909_s14  }
  0x13   :  { %s858_s19 = scalar_lea.hbm %s1029_s1, 2048 }
  0x14   :  { %p859_p8 = scmp.ne.s32.totalorder %s1029_s1, %s858_s19  ;;  %p862_p9 = scmp.lt.u32.totalorder %s858_s19, %s1029_s1 }
  0x16   :  { %p864_p10 = pnand %p862_p9, %p859_p8 }
  0x18   :  { %867 = shalt.err (!%p864_p10)
}
  0x19   :  { %s868_s24 = scalar_lea.vmem %s952_s27, 2048  ;;  %p873_p12 = scmp.lt.s32.totalorder %s952_s27, %s952_s27 }
  0x1a   :  { %p869_p11 = scmp.ne.s32.totalorder %s952_s27, %s868_s24  ;;  %p874_p13 = scmp.lt.s32.totalorder %s868_s24, %s868_s24 }
  0x1c   :  { %p875_p0 = por %p874_p13, %p873_p12 }
  0x1e   :  { %p876_p1 = pnand %p875_p0, %p869_p11 }
  0x20   :  { %879 = shalt.err (!%p876_p1)
}
  0x21   :  { %27 = dma.hbm_to_vmem [thread:$0]  %s1029_s1, 2048, %s952_s27, [#allocation4], %s908_s13, %s908_s13, %s909_s14  }
  0x22   :  { %s910_s26 = smov [#allocation7]   ;;  %s880_s8 = scalar_lea.hbm %s1033_s5, 2048 }
  0x23   :  { %s49_s28 = sshll.u32 %s910_s26, 4  ;;  %p881_p2 = scmp.ne.s32.totalorder %s1033_s5, %s880_s8  ;;  %s50_s28 = int_to_ptr.vmem [resolvable:$true] %s49_s28 }
  0x24   :  { %p884_p3 = scmp.lt.u32.totalorder %s880_s8, %s1033_s5 }
  0x26   :  { %p886_p4 = pnand %p884_p3, %p881_p2 }
  0x28   :  { %889 = shalt.err (!%p886_p4)
}
  0x29   :  { %s890_s15 = scalar_lea.vmem %s50_s28, 2048  ;;  %p895_p6 = scmp.lt.s32.totalorder %s50_s28, %s50_s28 }
  0x2a   :  { %p891_p5 = scmp.ne.s32.totalorder %s50_s28, %s890_s15  ;;  %p896_p7 = scmp.lt.s32.totalorder %s890_s15, %s890_s15 }
  0x2c   :  { %p897_p8 = por %p896_p7, %p895_p6 }
  0x2e   :  { %p898_p9 = pnand %p897_p8, %p891_p5 }
  0x30   :  { %901 = shalt.err (!%p898_p9)
}
  0x31   :  { %55 = dma.hbm_to_vmem [thread:$0]  %s1033_s5, 2048, %s50_s28, [#allocation6], %s908_s13, %s908_s13, %s909_s14  }
  0x32   :  { %902 = dma.done.wait [#allocation4], 2048  }
  0x33   :  { %903 = vsyncadd [#allocation4], 4294965248 }
  0x34   :  { %904 = dma.done.wait [#allocation6], 6144  }
  0x35   :  { %905 = vsyncadd [#allocation6], 4294961152  ;;  %v911_v0 = vmov 0.0   ;;  %v77_v1 = vld [vmem:[#allocation3] sm:$0xff]  ;;  %v78_v2 = vld [vmem:[#allocation3 + $0x8] sm:$0xff]  ;;  %vm71_vm0 = vcmask 31744  }
  0x36   :  { %67 = vst [vmem:[#allocation2] sm:$0xff] %v911_v0  ;;  %68 = vst [vmem:[#allocation2 + $0x8] sm:$0xf] %v911_v0  ;;  %v79_v3 = vld [vmem:[#allocation3 + $0x10] sm:$0xff]  ;;  %v702_v4 = vpack.c.bf16 %v78_v2, %v77_v1  ;;  %v80_v5 = vld [vmem:[#allocation3 + $0x18] sm:$0xff]  ;;  %vm73_vm1 = vcmask 27648  }
  0x37   :  { %v706_v6 = vpack.c.bf16 %v80_v5, %v79_v3  ;;  %v81_v7 = vld [vmem:[#allocation3 + $0x20] sm:$0xff]  ;;  %v82_v8 = vld [vmem:[#allocation3 + $0x28] sm:$0xff]  ;;  %v83_v9 = vld [vmem:[#allocation3 + $0x30] sm:$0xff]  ;;  %vm477_vm2 = vcmask 19456   ;;  %vm475_vm3 = vcmask 23552  }
  0x38   :  { %703 = vmatprep.subr.bf16.mxu0 %v702_v4  ;;  %v710_v10 = vpack.c.bf16 %v82_v8, %v81_v7  ;;  %v84_v11 = vld [vmem:[#allocation3 + $0x38] sm:$0xff]  ;;  %v69_v12 = vld [vmem:[%s1028_s0] sm:$0xff]  ;;  %v175_v14 = vld [vmem:[#allocation5] sm:$0xff] }
  0x39   :  { %705 = vmatpush3.bf16.msra.mxu0 %v702_v4  ;;  %v70_v13 = vld [vmem:[%s1028_s0 + $0x8] sm:$0xf]  ;;  %72 = vst.msk [vmem:[#allocation2] sm:$0xff] %vm71_vm0, %v69_v12  ;;  %v176_v15 = vld [vmem:[#allocation5 + $0x8] sm:$0xff]  ;;  %v177_v16 = vld [vmem:[#allocation5 + $0x10] sm:$0xff]  ;;  %v714_v22 = vpack.c.bf16 %v84_v11, %v83_v9 }
  0x3a   :  { %707 = vmatprep.subr.bf16.mxu0 %v706_v6  ;;  %74 = vst.msk [vmem:[#allocation2 + $0x8] sm:$0xf] %vm73_vm1, %v70_v13  ;;  %v734_v17 = vpack.c.bf16 %v176_v15, %v175_v14  ;;  %v178_v18 = vld [vmem:[#allocation5 + $0x18] sm:$0xff]  ;;  %v179_v20 = vld [vmem:[#allocation5 + $0x20] sm:$0xff]  ;;  %v180_v21 = vld [vmem:[#allocation5 + $0x28] sm:$0xff] }
  0x3b   :  { %v738_v19 = vpack.c.bf16 %v178_v18, %v177_v16  ;;  %v85_v23 = vld [vmem:[#allocation3 + $0x40] sm:$0xff]  ;;  %v86_v24 = vld [vmem:[#allocation3 + $0x48] sm:$0xff]  ;;  %v742_v25 = vpack.c.bf16 %v180_v21, %v179_v20  ;;  %v181_v26 = vld [vmem:[#allocation5 + $0x30] sm:$0xff] }
  0x3c   :  { %735 = vmatprep.subr.bf16.mxu1 %v734_v17  ;;  %v182_v27 = vld [vmem:[#allocation5 + $0x38] sm:$0xff]  ;;  %v718_v28 = vpack.c.bf16 %v86_v24, %v85_v23  ;;  %v87_v30 = vld [vmem:[#allocation3 + $0x50] sm:$0xff]  ;;  %v183_v33 = vld [vmem:[#allocation5 + $0x40] sm:$0xff] }
  0x3d   :  { %709 = vmatpush3.bf16.msra.mxu0 %v706_v6  ;;  %737 = vmatpush3.bf16.msra.mxu1 %v734_v17  ;;  %v88_v31 = vld [vmem:[#allocation3 + $0x58] sm:$0xff]  ;;  %v746_v32 = vpack.c.bf16 %v182_v27, %v181_v26  ;;  %v184_v34 = vld [vmem:[#allocation5 + $0x48] sm:$0xff]  ;;  %v89_v36 = vld [vmem:[#allocation3 + $0x60] sm:$0xff] }
  0x3e   :  { %711 = vmatprep.subr.bf16.mxu0 %v710_v10  ;;  %739 = vmatprep.subr.bf16.mxu1 %v738_v19  ;;  %v722_v35 = vpack.c.bf16 %v88_v31, %v87_v30  ;;  %v90_v37 = vld [vmem:[#allocation3 + $0x68] sm:$0xff]  ;;  %v750_v38 = vpack.c.bf16 %v184_v34, %v183_v33  ;;  %v185_v39 = vld [vmem:[#allocation5 + $0x50] sm:$0xff]  ;;  %v186_v40 = vld [vmem:[#allocation5 + $0x58] sm:$0xff] }
  0x3f   :  { %v726_v41 = vpack.c.bf16 %v90_v37, %v89_v36  ;;  %v91_v42 = vld [vmem:[#allocation3 + $0x70] sm:$0xff]  ;;  %v92_v43 = vld [vmem:[#allocation3 + $0x78] sm:$0xff]  ;;  %v754_v44 = vpack.c.bf16 %v186_v40, %v185_v39  ;;  %v187_v45 = vld [vmem:[#allocation5 + $0x60] sm:$0xff] }
  0x40   :  { %v75_v29 = vld [vmem:[#allocation2] sm:$0xff]  ;;  %v188_v46 = vld [vmem:[#allocation5 + $0x68] sm:$0xff]  ;;  %v730_v47 = vpack.c.bf16 %v92_v43, %v91_v42  ;;  %v190_v51 = vld [vmem:[#allocation5 + $0x78] sm:$0xff] }
  0x41   :  { %713 = vmatpush3.bf16.msra.mxu0 %v710_v10  ;;  %594 = vmatprep.mubr.f32.mxu0 %v75_v29  ;;  %v758_v48 = vpack.c.bf16 %v188_v46, %v187_v45  ;;  %v76_v49 = vld [vmem:[#allocation2 + $0x8] sm:$0xf]  ;;  %v189_v50 = vld [vmem:[#allocation5 + $0x70] sm:$0xff]  ;;  %v276_v53 = vld [vmem:[#allocation5 + $0x80] sm:$0xff] }
  0x42   :  { %715 = vmatprep.subr.bf16.mxu0 %v714_v22  ;;  %741 = vmatpush3.bf16.msra.mxu1 %v738_v19  ;;  %v762_v52 = vpack.c.bf16 %v190_v51, %v189_v50  ;;  %v277_v54 = vld [vmem:[#allocation5 + $0x88] sm:$0xff]  ;;  %v278_v55 = vld [vmem:[#allocation5 + $0x90] sm:$0xff]  ;;  %v279_v57 = vld [vmem:[#allocation5 + $0x98] sm:$0xff] }
  0x43   :  { %743 = vmatprep.subr.bf16.mxu1 %v742_v25  ;;  %v766_v56 = vpack.c.bf16 %v277_v54, %v276_v53  ;;  %v770_v58 = vpack.c.bf16 %v279_v57, %v278_v55  ;;  %v280_v59 = vld [vmem:[#allocation5 + $0xa0] sm:$0xff]  ;;  %v281_v60 = vld [vmem:[#allocation5 + $0xa8] sm:$0xff]  ;;  %v282_v62 = vld [vmem:[#allocation5 + $0xb0] sm:$0xff] }
  0x44   :  { %v774_v61 = vpack.c.bf16 %v281_v60, %v280_v59  ;;  %v283_v63 = vld [vmem:[#allocation5 + $0xb8] sm:$0xff]  ;;  %v284_v1 = vld [vmem:[#allocation5 + $0xc0] sm:$0xff]  ;;  %v285_v2 = vld [vmem:[#allocation5 + $0xc8] sm:$0xff] }
  0x45   :  { %717 = vmatpush3.bf16.msra.mxu0 %v714_v22  ;;  %v778_v0 = vpack.c.bf16 %v283_v63, %v282_v62  ;;  %v782_v3 = vpack.c.bf16 %v285_v2, %v284_v1  ;;  %v286_v4 = vld [vmem:[#allocation5 + $0xd0] sm:$0xff]  ;;  %v287_v5 = vld [vmem:[#allocation5 + $0xd8] sm:$0xff]  ;;  %v288_v7 = vld [vmem:[#allocation5 + $0xe0] sm:$0xff] }
  0x46   :  { %719 = vmatprep.subr.bf16.mxu0 %v718_v28  ;;  %745 = vmatpush3.bf16.msra.mxu1 %v742_v25  ;;  %v786_v6 = vpack.c.bf16 %v287_v5, %v286_v4  ;;  %v289_v8 = vld [vmem:[#allocation5 + $0xe8] sm:$0xff]  ;;  %v485_v10 = vld [vmem:[%s1030_s2] ss:$0 sm:$0xff]  ;;  %v291_v16 = vld [vmem:[#allocation5 + $0xf8] sm:$0xff] }
  0x47   :  { %747 = vmatprep.subr.bf16.mxu1 %v746_v32  ;;  %v790_v9 = vpack.c.bf16 %v289_v8, %v288_v7  ;;  %v290_v15 = vld [vmem:[#allocation5 + $0xf0] sm:$0xff]  ;;  %v377_v18 = vld [vmem:[#allocation7] sm:$0xff]  ;;  %v378_v19 = vld [vmem:[#allocation7 + $0x8] sm:$0xff] }
  0x48   :  { %v794_v17 = vpack.c.bf16 %v291_v16, %v290_v15  ;;  %v379_v20 = vld [vmem:[#allocation7 + $0x10] sm:$0xff]  ;;  %v798_v21 = vpack.c.bf16 %v378_v19, %v377_v18  ;;  %v380_v22 = vld [vmem:[#allocation7 + $0x18] sm:$0xff]  ;;  %v381_v24 = vld [vmem:[#allocation7 + $0x20] sm:$0xff] }
  0x49   :  { %721 = vmatpush3.bf16.msra.mxu0 %v718_v28  ;;  %v802_v23 = vpack.c.bf16 %v380_v22, %v379_v20  ;;  %v382_v25 = vld [vmem:[#allocation7 + $0x28] sm:$0xff]  ;;  %v383_v27 = vld [vmem:[#allocation7 + $0x30] sm:$0xff]  ;;  %v384_v28 = vld [vmem:[#allocation7 + $0x38] sm:$0xff] }
  0x4a   :  { %723 = vmatprep.subr.bf16.mxu0 %v722_v35  ;;  %749 = vmatpush3.bf16.msra.mxu1 %v746_v32  ;;  %v806_v26 = vpack.c.bf16 %v382_v25, %v381_v24  ;;  %v810_v29 = vpack.c.bf16 %v384_v28, %v383_v27  ;;  %v385_v30 = vld [vmem:[#allocation7 + $0x40] sm:$0xff]  ;;  %v386_v31 = vld [vmem:[#allocation7 + $0x48] sm:$0xff]  ;;  %v387_v33 = vld [vmem:[#allocation7 + $0x50] sm:$0xff] }
  0x4b   :  { %751 = vmatprep.subr.bf16.mxu1 %v750_v38  ;;  %v814_v32 = vpack.c.bf16 %v386_v31, %v385_v30  ;;  %v388_v34 = vld [vmem:[#allocation7 + $0x58] sm:$0xff]  ;;  %v389_v36 = vld [vmem:[#allocation7 + $0x60] sm:$0xff]  ;;  %v390_v37 = vld [vmem:[#allocation7 + $0x68] sm:$0xff] }
  0x4c   :  { %v486_v39 = vld [vmem:[%s1032_s4] ss:$0 sm:$0xff] }
  0x4d   :  { %725 = vmatpush3.bf16.msra.mxu0 %v722_v35  ;;  %v818_v35 = vpack.c.bf16 %v388_v34, %v387_v33  ;;  %v391_v46 = vld [vmem:[#allocation7 + $0x70] sm:$0xff] }
  0x4e   :  { %727 = vmatprep.subr.bf16.mxu0 %v726_v41  ;;  %753 = vmatpush3.bf16.msra.mxu1 %v750_v38  ;;  %v822_v38 = vpack.c.bf16 %v390_v37, %v389_v36 }
  0x4f   :  { %755 = vmatprep.subr.bf16.mxu1 %v754_v44 }
  0x51   :  { %729 = vmatpush3.bf16.msra.mxu0 %v726_v41 }
  0x52   :  { %731 = vmatprep.subr.bf16.mxu0 %v730_v47  ;;  %757 = vmatpush3.bf16.msra.mxu1 %v754_v44 }
  0x53   :  { %759 = vmatprep.subr.bf16.mxu1 %v758_v48 }
  0x55   :  { %733 = vmatpush3.bf16.msra.mxu0 %v730_v47  ;;  %v392_v47 = vld [vmem:[#allocation7 + $0x78] sm:$0xff] }
  0x56   :  { %761 = vmatpush3.bf16.msra.mxu1 %v758_v48  ;;  %767 = vmatprep.subr.bf16.mxu0 %v766_v56  ;;  %v826_v48 = vpack.c.bf16 %v392_v47, %v391_v46 }
  0x57   :  { %763 = vmatprep.subr.bf16.mxu1 %v762_v52 }
  0x58   :  { %595 = vmatmul.mubr.f32.vlgmr.msra.gmra.mrb[0].mxu0 %v76_v49  ;;  %v488_v49 = vld [vmem:[%s1032_s4 + $0x1] ss:$0 sm:$0xff] }
  0x59   :  { %769 = vmatpush3.bf16.msra.mxu0 %v766_v56  ;;  %v489_v56 = vld [vmem:[%s1034_s6] ss:$0 sm:$0xff] }
  0x5a   :  { %765 = vmatpush3.bf16.msra.mxu1 %v762_v52  ;;  %771 = vmatprep.subr.bf16.mxu0 %v770_v58 }
  0x5b   :  { %799 = vmatprep.subr.bf16.mxu1 %v798_v21 }
  0x5d   :  { %773 = vmatpush3.bf16.msra.mxu0 %v770_v58 }
  0x5e   :  { %775 = vmatprep.subr.bf16.mxu0 %v774_v61 }
  0x61   :  { %777 = vmatpush3.bf16.msra.mxu0 %v774_v61 }
  0x62   :  { %779 = vmatprep.subr.bf16.mxu0 %v778_v0 }
  0x65   :  { %781 = vmatpush3.bf16.msra.mxu0 %v778_v0 }
  0x66   :  { %783 = vmatprep.subr.bf16.mxu0 %v782_v3 }
  0x69   :  { %785 = vmatpush3.bf16.msra.mxu0 %v782_v3 }
  0x6a   :  { %787 = vmatprep.subr.bf16.mxu0 %v786_v6 }
  0x6d   :  { %789 = vmatpush3.bf16.msra.mxu0 %v786_v6 }
  0x6e   :  { %791 = vmatprep.subr.bf16.mxu0 %v790_v9 }
  0x71   :  { %793 = vmatpush3.bf16.msra.mxu0 %v790_v9 }
  0x72   :  { %795 = vmatprep.subr.bf16.mxu0 %v794_v17 }
  0x75   :  { %797 = vmatpush3.bf16.msra.mxu0 %v794_v17 }
 0x12b   :  { %v596_v11 = vpop.f32.mrb[0].mxu0 }
 0x12c   :  { %v166_v12 = vpop.f32.mrb[1].mxu0  ;;  %v172_v14 = vadd.f32 %v596_v11, %v485_v10 }
 0x12d   :  { %v167_v13 = vadd.f32 %v485_v10, %v166_v12 }
 0x12f   :  { %629 = vmatprep.mubr.f32.mxu1 %v167_v13 }
 0x130   :  { %630 = vmatmul.mubr.f32.vlgmr.msra.gmra.mrb[0].mxu1 %v172_v14 }
 0x131   :  { %801 = vmatpush3.bf16.msra.mxu1 %v798_v21 }
 0x132   :  { %803 = vmatprep.subr.bf16.mxu1 %v802_v23 }
 0x135   :  { %805 = vmatpush3.bf16.msra.mxu1 %v802_v23 }
 0x136   :  { %807 = vmatprep.subr.bf16.mxu1 %v806_v26 }
 0x139   :  { %809 = vmatpush3.bf16.msra.mxu1 %v806_v26 }
 0x13a   :  { %811 = vmatprep.subr.bf16.mxu1 %v810_v29 }
 0x13d   :  { %813 = vmatpush3.bf16.msra.mxu1 %v810_v29 }
 0x13e   :  { %815 = vmatprep.subr.bf16.mxu1 %v814_v32 }
 0x141   :  { %817 = vmatpush3.bf16.msra.mxu1 %v814_v32 }
 0x142   :  { %819 = vmatprep.subr.bf16.mxu1 %v818_v35 }
 0x145   :  { %821 = vmatpush3.bf16.msra.mxu1 %v818_v35 }
 0x146   :  { %823 = vmatprep.subr.bf16.mxu1 %v822_v38 }
 0x149   :  { %825 = vmatpush3.bf16.msra.mxu1 %v822_v38 }
 0x14a   :  { %827 = vmatprep.subr.bf16.mxu1 %v826_v48 }
 0x14d   :  { %829 = vmatpush3.bf16.msra.mxu1 %v826_v48 }
 0x203   :  { %v631_v40 = vpop.f32.mrb[0].mxu1 }
 0x204   :  { %v270_v41 = vadd.f32 %v631_v40, %v486_v39  ;;  %v264_v42 = vpop.f32.mrb[1].mxu1 }
 0x205   :  { %v265_v43 = vadd.f32 %v486_v39, %v264_v42 }
 0x206   :  { %v274_v45 = vmax.f32 %v270_v41, 0.0 }
 0x207   :  { %v273_v44 = vmax.f32 %v265_v43, 0.0 }
 0x209   :  { %664 = vmatprep.mubr.f32.mxu0 %v273_v44 }
 0x20a   :  { %665 = vmatmul.mubr.f32.vlgmr.msra.gmra.mrb[2].mxu0 %v274_v45 }
 0x2dd   :  { %v666_v50 = vpop.f32.mrb[2].mxu0 }
 0x2de   :  { %v372_v51 = vadd.f32 %v666_v50, %v488_v49  ;;  %v366_v52 = vpop.f32.mrb[3].mxu0 }
 0x2df   :  { %v367_v53 = vadd.f32 %v488_v49, %v366_v52 }
 0x2e0   :  { %v376_v55 = vmax.f32 %v372_v51, 0.0 }
 0x2e1   :  { %v375_v54 = vmax.f32 %v367_v53, 0.0 }
 0x2e3   :  { %699 = vmatprep.mubr.f32.mxu1 %v375_v54 }
 0x2e4   :  { %700 = vmatmul.mubr.f32.vlgmr.msra.gmra.mrb[2].mxu1 %v376_v55 }
 0x3b7   :  { %v701_v57 = vpop.f32.mrb[2].mxu1 }
 0x3b8   :  { %v472_v58 = vadd.f32 %v701_v57, %v489_v56  ;;  %v466_v59 = vpop.f32.mrb[3].mxu1 }
 0x3b9   :  { %v467_v60 = vadd.f32 %v489_v56, %v466_v59 }
 0x3ba   :  { %478 = vst.msk [vmem:[%s1035_s7 + $0x8] sm:$0xf] %vm477_vm2, %v472_v58 }
 0x3bb   :  { %476 = vst.msk [vmem:[%s1035_s7] sm:$0xff] %vm475_vm3, %v467_v60 }
 0x3bc   :  { %483 = vsyncpa [#allocation4], 1 }
 0x3bd   :  { %484 = vsyncpa [#allocation6], 1 }

</bundles_post_ra>
